<compile_context>
chip_gen: v5e
topology: v5e:2x2
jax: 0.10.0
libtpu: 0.0.40
codegen_flags: <defaults>
</compile_context>

<pallas_src>
import functools

import jax
import jax.numpy as jnp
from jax.experimental import pallas as pl
from jax.experimental.pallas import tpu as pltpu

VMEM = pltpu.MemorySpace.VMEM
NEG_SLOPE = 0.2
BN_EPS = 1e-5
MAX_TILE_M = 512      # rows per grid step (multiple of 16)
MAX_TILE_K = 2048     # contraction tile (multiple of 128) for deep layers


def _round_up(x, m):
    return ((x + m - 1) // m) * m


def _tile_m(m):
    return MAX_TILE_M if m >= MAX_TILE_M else _round_up(m, 16)


def _tile_k(k):
    # Single full-K block when small; otherwise the largest lane-aligned
    # divisor of K that is <= MAX_TILE_K (K is a multiple of 128 for all deep
    # DCGAN_D layers, so no K padding is ever required).
    if k <= MAX_TILE_K or k % 128 != 0:
        return k
    units = k // 128
    best = 1
    for cand in range(1, min(units, MAX_TILE_K // 128) + 1):
        if units % cand == 0:
            best = cand
    return best * 128


# ----------------------------- Pallas kernels -----------------------------

def _conv_lrelu_kernel(x_ref, w_ref, o_ref, acc_ref):
    # x: (TM, TK) bf16, w: (TK, OC) bf16, o: (TM, OC) bf16, acc: (TM, OC) f32
    @pl.when(pl.program_id(1) == 0)
    def _():
        acc_ref[...] = jnp.zeros_like(acc_ref)

    acc_ref[...] += jnp.dot(x_ref[...], w_ref[...],
                            preferred_element_type=jnp.float32)

    @pl.when(pl.program_id(1) == pl.num_programs(1) - 1)
    def _():
        acc = acc_ref[...]
        acc = jnp.where(acc >= 0.0, acc, acc * NEG_SLOPE)
        o_ref[...] = acc.astype(o_ref.dtype)


def _conv_stats_kernel(x_ref, w_ref, o_ref, s1_ref, s2_ref, acc_ref):
    # Conv matmul with the BatchNorm statistics (per-channel sum and
    # sum-of-squares, accumulated over the whole M range) fused into the
    # epilogue.  s1/s2 are (1, OC) resident accumulator outputs.
    m, k = pl.program_id(0), pl.program_id(1)

    @pl.when((m == 0) & (k == 0))
    def _():
        s1_ref[...] = jnp.zeros_like(s1_ref)
        s2_ref[...] = jnp.zeros_like(s2_ref)

    @pl.when(k == 0)
    def _():
        acc_ref[...] = jnp.zeros_like(acc_ref)

    acc_ref[...] += jnp.dot(x_ref[...], w_ref[...],
                            preferred_element_type=jnp.float32)

    @pl.when(k == pl.num_programs(1) - 1)
    def _():
        acc = acc_ref[...]
        o_ref[...] = acc
        s1_ref[...] += jnp.sum(acc, axis=0, keepdims=True)
        s2_ref[...] += jnp.sum(acc * acc, axis=0, keepdims=True)


def _bn_lrelu_kernel(x_ref, s1_ref, s2_ref, g_ref, b_ref, o_ref, *, inv_m):
    # Train-mode BatchNorm (batch mean / biased var via E[x^2] - E[x]^2),
    # affine, LeakyReLU(0.2); emits bf16 for the next layer's im2col.
    x = x_ref[...]
    mean = s1_ref[...] * inv_m
    var = s2_ref[...] * inv_m - mean * mean
    scale = jax.lax.rsqrt(var + BN_EPS) * g_ref[...]
    shift = b_ref[...] - mean * scale
    y = x * scale + shift
    y = jnp.where(y >= 0.0, y, y * NEG_SLOPE)
    o_ref[...] = y.astype(o_ref.dtype)


def _final_conv_mean_kernel(x_ref, w_ref, o_ref, *, inv_n):
    # Final 4x4 valid conv (OC = 1) fused with the mean over the batch.
    # OC = 1 would waste the MXU, so do a VPU broadcast-multiply + reduce.
    prod = x_ref[...].astype(jnp.float32) * w_ref[...].astype(jnp.float32)
    col = jnp.sum(prod, axis=0, keepdims=True)            # (1, K)
    o_ref[...] = jnp.sum(col, axis=1, keepdims=True) * inv_n


# ------------------------------ kernel wrappers -----------------------------

def _compiler_params(semantics, vmem_bytes):
    return pltpu.CompilerParams(
        dimension_semantics=semantics,
        vmem_limit_bytes=int(min(max(3 * vmem_bytes, 16 << 20), 64 << 20)),
    )


def conv_lrelu(patches, w2d):
    """LeakyReLU(conv) as an M/K-tiled bf16 matmul; returns (M, OC) bf16."""
    m, k = patches.shape
    oc = w2d.shape[1]
    tm, tk = _tile_m(m), _tile_k(k)
    mp = _round_up(m, tm)
    if mp != m:
        patches = jnp.pad(patches, ((0, mp - m), (0, 0)))
    vmem = 2 * (tm * tk * 2 + tk * oc * 2 + tm * oc * 2) + tm * oc * 4
    out = pl.pallas_call(
        _conv_lrelu_kernel,
        out_shape=jax.ShapeDtypeStruct((mp, oc), jnp.bfloat16),
        grid=(mp // tm, k // tk),
        in_specs=[
            pl.BlockSpec((tm, tk), lambda i, j: (i, j)),
            pl.BlockSpec((tk, oc), lambda i, j: (j, 0)),
        ],
        out_specs=pl.BlockSpec((tm, oc), lambda i, j: (i, 0)),
        scratch_shapes=[pltpu.VMEM((tm, oc), jnp.float32)],
        compiler_params=_compiler_params(("parallel", "arbitrary"), vmem),
        cost_estimate=pl.CostEstimate(
            flops=2 * mp * k * oc, transcendentals=0,
            bytes_accessed=mp * k * 2 + k * oc * 2 + mp * oc * 2),
    )(patches, w2d)
    return out[:m] if mp != m else out


def conv_bn_lrelu(patches, w2d, gamma, beta):
    """Conv (matmul + fused BN stats) -> BN(train) + LeakyReLU; (M, OC) bf16."""
    m, k = patches.shape
    oc = w2d.shape[1]
    tm, tk = _tile_m(m), _tile_k(k)
    mp = _round_up(m, tm)
    if mp != m:
        patches = jnp.pad(patches, ((0, mp - m), (0, 0)))

    # Pass 1: matmul; per-channel sum / sum-of-squares accumulated over M.
    vmem1 = 2 * (tm * tk * 2 + tk * oc * 2 + tm * oc * 4) + tm * oc * 4
    y, s1, s2 = pl.pallas_call(
        _conv_stats_kernel,
        out_shape=(jax.ShapeDtypeStruct((mp, oc), jnp.float32),
                   jax.ShapeDtypeStruct((1, oc), jnp.float32),
                   jax.ShapeDtypeStruct((1, oc), jnp.float32)),
        grid=(mp // tm, k // tk),
        in_specs=[
            pl.BlockSpec((tm, tk), lambda i, j: (i, j)),
            pl.BlockSpec((tk, oc), lambda i, j: (j, 0)),
        ],
        out_specs=(pl.BlockSpec((tm, oc), lambda i, j: (i, 0)),
                   pl.BlockSpec((1, oc), lambda i, j: (0, 0)),
                   pl.BlockSpec((1, oc), lambda i, j: (0, 0))),
        scratch_shapes=[pltpu.VMEM((tm, oc), jnp.float32)],
        compiler_params=_compiler_params(("arbitrary", "arbitrary"), vmem1),
        cost_estimate=pl.CostEstimate(
            flops=2 * mp * k * oc, transcendentals=0,
            bytes_accessed=mp * k * 2 + k * oc * 2 + mp * oc * 4),
    )(patches, w2d)

    # Pass 2: apply normalization + LeakyReLU, emit bf16 for the next layer.
    vmem2 = 2 * (tm * oc * 4 + tm * oc * 2) + 4 * oc * 4
    out = pl.pallas_call(
        functools.partial(_bn_lrelu_kernel, inv_m=1.0 / m),
        out_shape=jax.ShapeDtypeStruct((mp, oc), jnp.bfloat16),
        grid=(mp // tm,),
        in_specs=[
            pl.BlockSpec((tm, oc), lambda i: (i, 0)),
            pl.BlockSpec((1, oc), lambda i: (0, 0)),
            pl.BlockSpec((1, oc), lambda i: (0, 0)),
            pl.BlockSpec((1, oc), lambda i: (0, 0)),
            pl.BlockSpec((1, oc), lambda i: (0, 0)),
        ],
        out_specs=pl.BlockSpec((tm, oc), lambda i: (i, 0)),
        compiler_params=_compiler_params(("parallel",), vmem2),
    )(y, s1, s2, gamma, beta)
    return out[:m] if mp != m else out


def final_conv_mean(patches, w_row):
    """Final 4x4 valid conv (OC = 1) + mean over the batch -> shape (1,)."""
    n, _ = patches.shape
    npad = _round_up(n, 16)
    if npad != n:
        patches = jnp.pad(patches, ((0, npad - n), (0, 0)))
    out = pl.pallas_call(
        functools.partial(_final_conv_mean_kernel, inv_n=1.0 / n),
        out_shape=jax.ShapeDtypeStruct((1, 1), jnp.float32),
        in_specs=[pl.BlockSpec(memory_space=VMEM),
                  pl.BlockSpec(memory_space=VMEM)],
        out_specs=pl.BlockSpec(memory_space=VMEM),
    )(patches, w_row)
    return out.reshape(1)


# --------------------------------- glue ------------------------------------

def im2col_nhwc(x, kh, kw, stride, pad):
    """x: (N, H, W, C) -> bf16 patches (N*OH*OW, KH*KW*C), (kh, kw, c) order."""
    n, h, w, _ = x.shape
    x = x.astype(jnp.bfloat16)
    if pad:
        x = jnp.pad(x, ((0, 0), (pad, pad), (pad, pad), (0, 0)))
    oh = (h + 2 * pad - kh) // stride + 1
    ow = (w + 2 * pad - kw) // stride + 1
    cols = [x[:, i:i + stride * oh:stride, j:j + stride * ow:stride, :]
            for i in range(kh) for j in range(kw)]
    patches = jnp.concatenate(cols, axis=-1).reshape(n * oh * ow, -1)
    return patches, oh, ow


def _prep_w2d(w_oihw):
    # (OC, C, KH, KW) -> (KH*KW*C, OC) bf16, matching the im2col column order.
    oc = w_oihw.shape[0]
    return w_oihw.transpose(0, 2, 3, 1).reshape(oc, -1).T.astype(jnp.bfloat16)


def init_params(isize, nc, ndf, n_extra_layers, key):
    assert isize % 16 == 0, "isize has to be a multiple of 16"
    keys = iter(jax.random.split(key, 64))
    layers = []

    def conv_layer(kind, out_c, in_c, ksz, stride, pad, with_bn):
        w = 0.02 * jax.random.normal(next(keys), (out_c, in_c, ksz, ksz),
                                     jnp.float32)
        layer = dict(kind=kind, w=w, w2d=_prep_w2d(w), oc=out_c,
                     kh=ksz, kw=ksz, stride=stride, pad=pad)
        if with_bn:
            layer["gamma"] = jnp.ones((1, out_c), jnp.float32)
            layer["beta"] = jnp.zeros((1, out_c), jnp.float32)
        return layer

    # initial: conv(nc -> ndf, 4, 2, 1) + LeakyReLU(0.2)
    layers.append(conv_layer("conv_lrelu", ndf, nc, 4, 2, 1, with_bn=False))
    csize, cndf = isize // 2, ndf
    # extra layers: conv(cndf -> cndf, 3, 1, 1) + BN + LeakyReLU
    for _ in range(n_extra_layers):
        layers.append(conv_layer("conv_bn_lrelu", cndf, cndf, 3, 1, 1, True))
    # pyramid: conv(cndf -> 2*cndf, 4, 2, 1) + BN + LeakyReLU until csize == 4
    while csize > 4:
        layers.append(conv_layer("conv_bn_lrelu", cndf * 2, cndf, 4, 2, 1, True))
        cndf, csize = cndf * 2, csize // 2
    # final: conv(cndf -> 1, 4, 1, 0), then mean over the batch
    wf = 0.02 * jax.random.normal(next(keys), (1, cndf, 4, 4), jnp.float32)
    layers.append(dict(
        kind="final", w=wf,
        w2d=wf.transpose(0, 2, 3, 1).reshape(1, -1).astype(jnp.bfloat16),
        oc=1, kh=4, kw=4, stride=1, pad=0))
    return layers


def dcgan_d_forward(x_nchw, layers):
    # Single layout change: NCHW -> NHWC; everything else is channel-last.
    x = jnp.transpose(x_nchw, (0, 2, 3, 1))
    n = x.shape[0]
    for layer in layers:
        patches, oh, ow = im2col_nhwc(x, layer["kh"], layer["kw"],
                                      layer["stride"], layer["pad"])
        if layer["kind"] == "final":
            return final_conv_mean(patches, layer["w2d"])
        if layer["kind"] == "conv_lrelu":
            y = conv_lrelu(patches, layer["w2d"])
        else:  # conv_bn_lrelu
            y = conv_bn_lrelu(patches, layer["w2d"],
                              layer["gamma"], layer["beta"])
        x = y.reshape(n, oh, ow, layer["oc"])
    raise RuntimeError("final layer missing")


# ------------------------- pure-JAX reference check -------------------------

def _reference_forward(x, layers):
    # bf16 conv inputs + f32 accumulation, matching the kernel's MXU precision.
    def lrelu(v):
        return jnp.where(v >= 0.0, v, v * NEG_SLOPE)

    for layer in layers:
        s, p = layer["stride"], layer["pad"]
        y = jax.lax.conv_general_dilated(
            x.astype(jnp.bfloat16), layer["w"].astype(jnp.bfloat16),
            window_strides=(s, s), padding=[(p, p), (p, p)],
            dimension_numbers=("NCHW", "OIHW", "NCHW"),
            preferred_element_type=jnp.float32)
        if layer["kind"] == "conv_lrelu":
            x = lrelu(y)
        elif layer["kind"] == "conv_bn_lrelu":
            mean = jnp.mean(y, axis=(0, 2, 3), keepdims=True)
            var = jnp.mean((y - mean) ** 2, axis=(0, 2, 3), keepdims=True)
            g = layer["gamma"].reshape(1, -1, 1, 1)
            b = layer["beta"].reshape(1, -1, 1, 1)
            x = lrelu((y - mean) * jax.lax.rsqrt(var + BN_EPS) * g + b)
        else:
            return jnp.mean(y, axis=0).reshape(1)
    raise RuntimeError("final layer missing")


# ----------------------------------- main -----------------------------------

if __name__ == "__main__":
    isize, nc, ndf, batch, n_extra = 16, 4, 8, 2, 0
    key = jax.random.PRNGKey(0)
    k_x, k_w = jax.random.split(key)
    x = jax.random.normal(k_x, (batch, nc, isize, isize), jnp.float32)
    layers = init_params(isize, nc, ndf, n_extra, k_w)

    out = jax.block_until_ready(dcgan_d_forward(x, layers))
    assert out.shape == (1,), out.shape

    ref = jax.block_until_ready(_reference_forward(x, layers))
    assert jnp.allclose(out, ref, rtol=3e-2, atol=3e-3), (out, ref)

    print("KERNEL_OK")
</pallas_src>

<mosaic_0001>
module attributes {stable_mosaic.version = 11 : i64} {
  func.func @_conv_lrelu_kernel(%arg0: i32, %arg1: i32, %arg2: memref<128x64xbf16, #tpu.memory_space<vmem>>, %arg3: memref<64x8xbf16, #tpu.memory_space<vmem>>, %arg4: memref<128x8xbf16, #tpu.memory_space<vmem>>, %arg5: memref<128x8xf32, #tpu.memory_space<vmem>>) attributes {dimension_semantics = [#tpu.dimension_semantics<parallel>, #tpu.dimension_semantics<arbitrary>], iteration_bounds = array<i64: 1, 1>, scalar_prefetch = 0 : i64, scratch_operands = 1 : i64, tpu.core_type = #tpu.core_type<tc>, window_params = [{transform_indices = @transform_0, window_bounds = array<i64: 128, 64>}, {transform_indices = @transform_1, window_bounds = array<i64: 64, 8>}, {transform_indices = @transform_2, window_bounds = array<i64: 128, 8>}]} {
    %c0_i32 = arith.constant 0 : i32
    %0 = arith.cmpi eq, %arg1, %c0_i32 : i32
    %1 = arith.extui %0 : i1 to i32
    %c0_i32_0 = arith.constant 0 : i32
    %2 = arith.cmpi ne, %1, %c0_i32_0 : i32
    scf.if %2 {
      %cst_10 = arith.constant 0.000000e+00 : f32
      %12 = vector.broadcast %cst_10 : f32 to vector<128x8xf32>
      %c0_11 = arith.constant 0 : index
      %c0_12 = arith.constant 0 : index
      %13 = vector.load %arg5[%c0_11, %c0_12] : memref<128x8xf32, #tpu.memory_space<vmem>>, vector<128x8xf32>
      tpu.vector_store %arg5[%c0_11, %c0_12], %12 {strides = array<i32>} : memref<128x8xf32, #tpu.memory_space<vmem>>, vector<128x8xf32>,
    } else {
    }
    %c0 = arith.constant 0 : index
    %c0_1 = arith.constant 0 : index
    %3 = vector.load %arg5[%c0, %c0_1] : memref<128x8xf32, #tpu.memory_space<vmem>>, vector<128x8xf32>
    %c0_2 = arith.constant 0 : index
    %c0_3 = arith.constant 0 : index
    %4 = vector.load %arg2[%c0_2, %c0_3] : memref<128x64xbf16, #tpu.memory_space<vmem>>, vector<128x64xbf16>
    %c0_4 = arith.constant 0 : index
    %c0_5 = arith.constant 0 : index
    %5 = vector.load %arg3[%c0_4, %c0_5] : memref<64x8xbf16, #tpu.memory_space<vmem>>, vector<64x8xbf16>
    %cst = arith.constant dense<0.000000e+00> : vector<128x8xf32>
    %6 = tpu.matmul %4, %5, %cst {dimension_numbers = #tpu.dot_dimension_numbers<[1], [0], [0], [1], [0, 0, 1, 1], [], []>} : vector<128x64xbf16>, vector<64x8xbf16>, vector<128x8xf32> -> vector<128x8xf32>
    %7 = arith.addf %3, %6 : vector<128x8xf32>
    %c0_6 = arith.constant 0 : index
    %c0_7 = arith.constant 0 : index
    %8 = vector.load %arg5[%c0_6, %c0_7] : memref<128x8xf32, #tpu.memory_space<vmem>>, vector<128x8xf32>
    tpu.vector_store %arg5[%c0_6, %c0_7], %7 {strides = array<i32>} : memref<128x8xf32, #tpu.memory_space<vmem>>, vector<128x8xf32>,
    %c0_i32_8 = arith.constant 0 : i32
    %9 = arith.cmpi eq, %arg1, %c0_i32_8 : i32
    %10 = arith.extui %9 : i1 to i32
    %c0_i32_9 = arith.constant 0 : i32
    %11 = arith.cmpi ne, %10, %c0_i32_9 : i32
    scf.if %11 {
      %c0_10 = arith.constant 0 : index
      %c0_11 = arith.constant 0 : index
      %12 = vector.load %arg5[%c0_10, %c0_11] : memref<128x8xf32, #tpu.memory_space<vmem>>, vector<128x8xf32>
      %cst_12 = arith.constant 0.000000e+00 : f32
      %13 = vector.broadcast %cst_12 : f32 to vector<128x8xf32>
      %14 = arith.cmpf oge, %12, %13 : vector<128x8xf32>
      %cst_13 = arith.constant 2.000000e-01 : f32
      %15 = vector.broadcast %cst_13 : f32 to vector<128x8xf32>
      %16 = arith.mulf %12, %15 : vector<128x8xf32>
      %17 = arith.select %14, %12, %16 : vector<128x8xi1>, vector<128x8xf32>
      %18 = arith.truncf %17 : vector<128x8xf32> to vector<128x8xbf16>
      %c0_14 = arith.constant 0 : index
      %c0_15 = arith.constant 0 : index
      %19 = vector.load %arg4[%c0_14, %c0_15] : memref<128x8xbf16, #tpu.memory_space<vmem>>, vector<128x8xbf16>
      tpu.vector_store %arg4[%c0_14, %c0_15], %18 {strides = array<i32>} : memref<128x8xbf16, #tpu.memory_space<vmem>>, vector<128x8xbf16>,
    } else {
    }
    return
  }
  func.func @transform_0(%arg0: i32, %arg1: i32) -> (i32, i32) {
    %c0_i32 = arith.constant 0 : i32
    return %arg0, %arg1 : i32, i32
  }
  func.func @transform_1(%arg0: i32, %arg1: i32) -> (i32, i32) {
    %c0_i32 = arith.constant 0 : i32
    %c0_i32_0 = arith.constant 0 : i32
    return %arg1, %c0_i32 : i32, i32
  }
  func.func @transform_2(%arg0: i32, %arg1: i32) -> (i32, i32) {
    %c0_i32 = arith.constant 0 : i32
    %c0_i32_0 = arith.constant 0 : i32
    return %arg0, %c0_i32 : i32, i32
  }
}

</mosaic_0001>

<bundles_post_ra>
// kernel: tpu_custom_call.1
= control target key start
LH: loop header
LB: loop body
LE: loop exit
PB: predicated region body
PF: predicated region fallthrough
CT: control target
= control target key end

     0   :  { %vm16_vm0 = vcmask 64512   ;;  %v429_v2 = vmov 0.0   ;;  %vm137_vm1 = vcmask 523264   ;;  %vm327_vm4 = vcmask 60416   ;;  %s585_s1 = inlined_call_operand.vmem [shape: bf16[64,8], index: 1, kind: input, shape index: {}]   ;;  %s586_s0 = inlined_call_operand.vmem [shape: bf16[128,64], index: 0, kind: input, shape index: {}]   ;;  %s587_s2 = inlined_call_operand.vmem [shape: bf16[128,8], index: 2, kind: output, shape index: {}]  }
   0x1   :  { %v415_v0 = vld [vmem:[%s585_s1 + $0x18] sm:$0xff]  ;;  %v414_v1 = vld [vmem:[%s585_s1 + $0x10] sm:$0xff]  ;;  %17 = vst.msk [vmem:[#allocation2] sm:$0xff] %vm16_vm0, %v429_v2  ;;  %v413_v3 = vld [vmem:[%s585_s1 + $0x8] sm:$0xff] }
   0x2   :  { %166 = vmatpush.bf16.msra.mxu0 %v415_v0  ;;  %416 = vmatpush.bf16.msra.mxu1 %v415_v0  ;;  %18 = vst.msk [vmem:[#allocation2 + $0x8] sm:$0xff] %vm16_vm0, %v429_v2  ;;  %v412_v4 = vld [vmem:[%s585_s1] sm:$0xff]  ;;  %v406_v6 = vld [vmem:[%s586_s0 + $0x10] sm:$0xff]  ;;  %v405_v9 = vld [vmem:[%s586_s0 + $0x8] sm:$0xff] }
   0x3   :  { %417 = vmatpush.bf16.msra.mxu2 %v415_v0  ;;  %418 = vmatpush.bf16.msra.mxu3 %v415_v0  ;;  %19 = vst.msk [vmem:[#allocation2 + $0x10] sm:$0xff] %vm16_vm0, %v429_v2  ;;  %v404_v5 = vld [vmem:[%s586_s0] sm:$0xff]  ;;  %v410_v8 = vld [vmem:[%s586_s0 + $0x30] sm:$0xff]  ;;  %v407_v10 = vld [vmem:[%s586_s0 + $0x18] sm:$0xff] }
   0x4   :  { %20 = vst.msk [vmem:[#allocation2 + $0x18] sm:$0xff] %vm16_vm0, %v429_v2  ;;  %v408_v7 = vld [vmem:[%s586_s0 + $0x20] sm:$0xff]  ;;  %v409_v11 = vld [vmem:[%s586_s0 + $0x28] sm:$0xff]  ;;  %v411_v12 = vld [vmem:[%s586_s0 + $0x38] sm:$0xff] }
   0x5   :  { %21 = vst.msk [vmem:[#allocation2 + $0x20] sm:$0xff] %vm16_vm0, %v429_v2 }
   0x6   :  { %167 = vmatpush.bf16.msra.mxu0 %v414_v1  ;;  %419 = vmatpush.bf16.msra.mxu1 %v414_v1  ;;  %22 = vst.msk [vmem:[#allocation2 + $0x28] sm:$0xff] %vm16_vm0, %v429_v2 }
   0x7   :  { %420 = vmatpush.bf16.msra.mxu2 %v414_v1  ;;  %421 = vmatpush.bf16.msra.mxu3 %v414_v1  ;;  %23 = vst.msk [vmem:[#allocation2 + $0x30] sm:$0xff] %vm16_vm0, %v429_v2 }
   0x8   :  { %24 = vst.msk [vmem:[#allocation2 + $0x38] sm:$0xff] %vm16_vm0, %v429_v2  ;;  %v33_v13 = vld [vmem:[#allocation2] sm:$0xff] }
   0x9   :  { %25 = vst.msk [vmem:[#allocation2 + $0x40] sm:$0xff] %vm16_vm0, %v429_v2  ;;  %v34_v21 = vld [vmem:[#allocation2 + $0x8] sm:$0xff] }
   0xa   :  { %168 = vmatpush.bf16.msra.mxu0 %v413_v3  ;;  %422 = vmatpush.bf16.msra.mxu1 %v413_v3  ;;  %26 = vst.msk [vmem:[#allocation2 + $0x48] sm:$0xff] %vm16_vm0, %v429_v2  ;;  %v35_v40 = vld [vmem:[#allocation2 + $0x10] sm:$0xff] }
   0xb   :  { %423 = vmatpush.bf16.msra.mxu2 %v413_v3  ;;  %424 = vmatpush.bf16.msra.mxu3 %v413_v3  ;;  %27 = vst.msk [vmem:[#allocation2 + $0x50] sm:$0xff] %vm16_vm0, %v429_v2 }
   0xc   :  { %28 = vst.msk [vmem:[#allocation2 + $0x58] sm:$0xff] %vm16_vm0, %v429_v2  ;;  %v37_v14 = vld [vmem:[#allocation2 + $0x20] sm:$0xff] }
   0xd   :  { %29 = vst.msk [vmem:[#allocation2 + $0x60] sm:$0xff] %vm16_vm0, %v429_v2  ;;  %v38_v22 = vld [vmem:[#allocation2 + $0x28] sm:$0xff] }
   0xe   :  { %169 = vmatpush.bf16.msra.mxu0 %v412_v4  ;;  %425 = vmatpush.bf16.msra.mxu1 %v412_v4  ;;  %30 = vst.msk [vmem:[#allocation2 + $0x68] sm:$0xff] %vm16_vm0, %v429_v2  ;;  %v39_v41 = vld [vmem:[#allocation2 + $0x30] sm:$0xff] }
   0xf   :  { %426 = vmatpush.bf16.msra.mxu2 %v412_v4  ;;  %427 = vmatpush.bf16.msra.mxu3 %v412_v4  ;;  %31 = vst.msk [vmem:[#allocation2 + $0x70] sm:$0xff] %vm16_vm0, %v429_v2 }
  0x10   :  { %32 = vst.msk [vmem:[#allocation2 + $0x78] sm:$0xff] %vm16_vm0, %v429_v2  ;;  %v41_v19 = vld [vmem:[#allocation2 + $0x40] sm:$0xff]  ;;  %v36_v2 = vld [vmem:[#allocation2 + $0x18] sm:$0xff] }
  0x11   :  { %396 = vmatmul.msk.bf16.vlgmr.msra.gmra.mxu0 %vm137_vm1, %v404_v5  ;;  %398 = vmatmul.msk.bf16.vlgmr.msra.gmra.mxu1 %vm137_vm1, %v406_v6  ;;  %v42_v36 = vld [vmem:[#allocation2 + $0x48] sm:$0xff] }
  0x12   :  { %400 = vmatmul.msk.bf16.vlgmr.msra.gmra.mxu2 %vm137_vm1, %v408_v7  ;;  %402 = vmatmul.msk.bf16.vlgmr.msra.gmra.mxu3 %vm137_vm1, %v410_v8  ;;  %v43_v62 = vld [vmem:[#allocation2 + $0x50] sm:$0xff]  ;;  %v40_v7 = vld [vmem:[#allocation2 + $0x38] sm:$0xff] }
  0x14   :  { %v45_v20 = vld [vmem:[#allocation2 + $0x60] sm:$0xff] }
  0x15   :  { %v46_v37 = vld [vmem:[#allocation2 + $0x68] sm:$0xff] }
  0x16   :  { %v47_v63 = vld [vmem:[#allocation2 + $0x70] sm:$0xff] }
  0x21   :  { %397 = vmatmul.msk.bf16.gmra.mxu0 %vm137_vm1, %v405_v9  ;;  %399 = vmatmul.msk.bf16.gmra.mxu1 %vm137_vm1, %v407_v10 }
  0x22   :  { %401 = vmatmul.msk.bf16.gmra.mxu2 %vm137_vm1, %v409_v11  ;;  %403 = vmatmul.msk.bf16.gmra.mxu3 %vm137_vm1, %v411_v12 }
  0x8e   :  { %v171_v15 = vpop.f32.mrf.mxu0  ;;  %v181_v16 = vpop.f32.mrf.mxu1 }
  0x8f   :  { %v211_v17 = vadd.f32 %v171_v15, %v33_v13  ;;  %v215_v18 = vadd.f32 %v181_v16, %v37_v14 }
  0x91   :  { %228 = vst.msk [vmem:[#allocation2] sm:$0xff] %vm16_vm0, %v211_v17 }
  0x92   :  { %232 = vst.msk [vmem:[#allocation2 + $0x20] sm:$0xff] %vm16_vm0, %v215_v18 }
  0x95   :  { %v191_v23 = vpop.f32.mrf.mxu2  ;;  %v201_v24 = vpop.f32.mrf.mxu3 }
  0x96   :  { %v219_v25 = vadd.f32 %v191_v23, %v41_v19  ;;  %v223_v26 = vadd.f32 %v201_v24, %v45_v20  ;;  %v173_v27 = vpop.f32.mrf.mxu0  ;;  %v183_v28 = vpop.f32.mrf.mxu1 }
  0x97   :  { %v212_v29 = vadd.f32 %v173_v27, %v34_v21  ;;  %v216_v30 = vadd.f32 %v183_v28, %v38_v22  ;;  %v48_v27 = vld [vmem:[#allocation2 + $0x78] sm:$0xff] }
  0x98   :  { %v247_v31 = vld [vmem:[#allocation2] sm:$0xff]  ;;  %236 = vst.msk [vmem:[#allocation2 + $0x40] sm:$0xff] %vm16_vm0, %v219_v25 }
  0x99   :  { %vm263_vm2 = vcmp.ge.f32.partialorder %v247_v31, 0.0  ;;  %v279_v32 = vmul.f32 0.2, %v247_v31  ;;  %v251_v33 = vld [vmem:[#allocation2 + $0x20] sm:$0xff]  ;;  %240 = vst.msk [vmem:[#allocation2 + $0x60] sm:$0xff] %vm16_vm0, %v223_v26  ;;  %v44_v26 = vld [vmem:[#allocation2 + $0x58] sm:$0xff] }
  0x9a   :  { %vm267_vm3 = vcmp.ge.f32.partialorder %v251_v33, 0.0  ;;  %v283_v34 = vmul.f32 0.2, %v251_v33  ;;  %229 = vst.msk [vmem:[#allocation2 + $0x8] sm:$0xff] %vm16_vm0, %v212_v29 }
  0x9b   :  { %v295_v35 = vsel %vm263_vm2, %v247_v31, %v279_v32  ;;  %233 = vst.msk [vmem:[#allocation2 + $0x28] sm:$0xff] %vm16_vm0, %v216_v30 }
  0x9c   :  { %v311_v38 = vpack.c.bf16 %v295_v35, %v295_v35  ;;  %v299_v39 = vsel %vm267_vm3, %v251_v33, %v283_v34 }
  0x9d   :  { %v315_v42 = vpack.c.bf16 %v299_v39, %v299_v39  ;;  %v193_v43 = vpop.f32.mrf.mxu2  ;;  %v203_v44 = vpop.f32.mrf.mxu3 }
  0x9e   :  { %328 = vst.msk [vmem:[%s587_s2] sm:$0xf] %vm327_vm4, %v311_v38  ;;  %v220_v45 = vadd.f32 %v193_v43, %v42_v36  ;;  %v224_v46 = vadd.f32 %v203_v44, %v46_v37  ;;  %v176_v47 = vpop.f32.mrf.mxu0  ;;  %v186_v48 = vpop.f32.mrf.mxu1 }
  0x9f   :  { %332 = vst.msk [vmem:[%s587_s2 + $0x10] sm:$0xf] %vm327_vm4, %v315_v42  ;;  %v255_v49 = vld [vmem:[#allocation2 + $0x40] sm:$0xff]  ;;  %v213_v50 = vadd.f32 %v176_v47, %v35_v40  ;;  %v217_v51 = vadd.f32 %v186_v48, %v39_v41 }
  0xa0   :  { %vm271_vm5 = vcmp.ge.f32.partialorder %v255_v49, 0.0  ;;  %v287_v52 = vmul.f32 0.2, %v255_v49  ;;  %v259_v53 = vld [vmem:[#allocation2 + $0x60] sm:$0xff]  ;;  %237 = vst.msk [vmem:[#allocation2 + $0x48] sm:$0xff] %vm16_vm0, %v220_v45 }
  0xa1   :  { %vm275_vm6 = vcmp.ge.f32.partialorder %v259_v53, 0.0  ;;  %v291_v54 = vmul.f32 0.2, %v259_v53  ;;  %v248_v55 = vld [vmem:[#allocation2 + $0x8] sm:$0xff]  ;;  %241 = vst.msk [vmem:[#allocation2 + $0x68] sm:$0xff] %vm16_vm0, %v224_v46 }
  0xa2   :  { %v303_v56 = vsel %vm271_vm5, %v255_v49, %v287_v52  ;;  %vm264_vm7 = vcmp.ge.f32.partialorder %v248_v55, 0.0  ;;  %v280_v57 = vmul.f32 0.2, %v248_v55  ;;  %v252_v58 = vld [vmem:[#allocation2 + $0x28] sm:$0xff]  ;;  %230 = vst.msk [vmem:[#allocation2 + $0x10] sm:$0xff] %vm16_vm0, %v213_v50 }
  0xa3   :  { %v319_v59 = vpack.c.bf16 %v303_v56, %v303_v56  ;;  %v307_v60 = vsel %vm275_vm6, %v259_v53, %v291_v54  ;;  %vm268_vm8 = vcmp.ge.f32.partialorder %v252_v58, 0.0  ;;  %v284_v61 = vmul.f32 0.2, %v252_v58  ;;  %234 = vst.msk [vmem:[#allocation2 + $0x30] sm:$0xff] %vm16_vm0, %v217_v51 }
  0xa4   :  { %v323_v0 = vpack.c.bf16 %v307_v60, %v307_v60  ;;  %v296_v1 = vsel %vm264_vm7, %v248_v55, %v280_v57 }
  0xa5   :  { %336 = vst.msk [vmem:[%s587_s2 + $0x20] sm:$0xf] %vm327_vm4, %v319_v59  ;;  %v312_v3 = vpack.c.bf16 %v296_v1, %v296_v1  ;;  %v300_v4 = vsel %vm268_vm8, %v252_v58, %v284_v61  ;;  %v196_v5 = vpop.f32.mrf.mxu2  ;;  %v206_v6 = vpop.f32.mrf.mxu3 }
  0xa6   :  { %340 = vst.msk [vmem:[%s587_s2 + $0x30] sm:$0xf] %vm327_vm4, %v323_v0  ;;  %v316_v8 = vpack.c.bf16 %v300_v4, %v300_v4  ;;  %v221_v9 = vadd.f32 %v196_v5, %v43_v62  ;;  %v225_v10 = vadd.f32 %v206_v6, %v47_v63  ;;  %v178_v11 = vpop.f32.mrf.mxu0  ;;  %v188_v12 = vpop.f32.mrf.mxu1 }
  0xa7   :  { %329 = vst.msk [vmem:[%s587_s2 + $0x4] sm:$0xf] %vm327_vm4, %v312_v3  ;;  %v256_v13 = vld [vmem:[#allocation2 + $0x48] sm:$0xff]  ;;  %v214_v14 = vadd.f32 %v178_v11, %v36_v2  ;;  %v218_v17 = vadd.f32 %v188_v12, %v40_v7 }
  0xa8   :  { %333 = vst.msk [vmem:[%s587_s2 + $0x14] sm:$0xf] %vm327_vm4, %v316_v8  ;;  %vm272_vm9 = vcmp.ge.f32.partialorder %v256_v13, 0.0  ;;  %v288_v15 = vmul.f32 0.2, %v256_v13  ;;  %v260_v16 = vld [vmem:[#allocation2 + $0x68] sm:$0xff] }
  0xa9   :  { %vm276_vm10 = vcmp.ge.f32.partialorder %v260_v16, 0.0  ;;  %v292_v18 = vmul.f32 0.2, %v260_v16  ;;  %v249_v19 = vld [vmem:[#allocation2 + $0x10] sm:$0xff]  ;;  %238 = vst.msk [vmem:[#allocation2 + $0x50] sm:$0xff] %vm16_vm0, %v221_v9 }
  0xaa   :  { %v304_v20 = vsel %vm272_vm9, %v256_v13, %v288_v15  ;;  %vm265_vm11 = vcmp.ge.f32.partialorder %v249_v19, 0.0  ;;  %v281_v21 = vmul.f32 0.2, %v249_v19  ;;  %v253_v22 = vld [vmem:[#allocation2 + $0x30] sm:$0xff]  ;;  %242 = vst.msk [vmem:[#allocation2 + $0x70] sm:$0xff] %vm16_vm0, %v225_v10 }
  0xab   :  { %v320_v23 = vpack.c.bf16 %v304_v20, %v304_v20  ;;  %v308_v24 = vsel %vm276_vm10, %v260_v16, %v292_v18  ;;  %vm269_vm12 = vcmp.ge.f32.partialorder %v253_v22, 0.0  ;;  %v285_v25 = vmul.f32 0.2, %v253_v22  ;;  %231 = vst.msk [vmem:[#allocation2 + $0x18] sm:$0xff] %vm16_vm0, %v214_v14 }
  0xac   :  { %v324_v28 = vpack.c.bf16 %v308_v24, %v308_v24  ;;  %v297_v29 = vsel %vm265_vm11, %v249_v19, %v281_v21  ;;  %235 = vst.msk [vmem:[#allocation2 + $0x38] sm:$0xff] %vm16_vm0, %v218_v17 }
  0xad   :  { %337 = vst.msk [vmem:[%s587_s2 + $0x24] sm:$0xf] %vm327_vm4, %v320_v23  ;;  %v313_v30 = vpack.c.bf16 %v297_v29, %v297_v29  ;;  %v301_v31 = vsel %vm269_vm12, %v253_v22, %v285_v25  ;;  %v198_v32 = vpop.f32.mrf.mxu2  ;;  %v208_v33 = vpop.f32.mrf.mxu3 }
  0xae   :  { %341 = vst.msk [vmem:[%s587_s2 + $0x34] sm:$0xf] %vm327_vm4, %v324_v28  ;;  %v317_v34 = vpack.c.bf16 %v301_v31, %v301_v31  ;;  %v222_v35 = vadd.f32 %v198_v32, %v44_v26  ;;  %v226_v36 = vadd.f32 %v208_v33, %v48_v27 }
  0xaf   :  { %330 = vst.msk [vmem:[%s587_s2 + $0x8] sm:$0xf] %vm327_vm4, %v313_v30 }
  0xb0   :  { %334 = vst.msk [vmem:[%s587_s2 + $0x18] sm:$0xf] %vm327_vm4, %v317_v34  ;;  %v257_v37 = vld [vmem:[#allocation2 + $0x50] sm:$0xff] }
  0xb1   :  { %vm273_vm13 = vcmp.ge.f32.partialorder %v257_v37, 0.0  ;;  %v289_v38 = vmul.f32 0.2, %v257_v37  ;;  %v261_v39 = vld [vmem:[#allocation2 + $0x70] sm:$0xff]  ;;  %239 = vst.msk [vmem:[#allocation2 + $0x58] sm:$0xff] %vm16_vm0, %v222_v35 }
  0xb2   :  { %vm277_vm14 = vcmp.ge.f32.partialorder %v261_v39, 0.0  ;;  %v293_v40 = vmul.f32 0.2, %v261_v39  ;;  %v250_v41 = vld [vmem:[#allocation2 + $0x18] sm:$0xff]  ;;  %243 = vst.msk [vmem:[#allocation2 + $0x78] sm:$0xff] %vm16_vm0, %v226_v36 }
  0xb3   :  { %v305_v42 = vsel %vm273_vm13, %v257_v37, %v289_v38  ;;  %vm266_vm15 = vcmp.ge.f32.partialorder %v250_v41, 0.0  ;;  %v282_v43 = vmul.f32 0.2, %v250_v41  ;;  %v254_v44 = vld [vmem:[#allocation2 + $0x38] sm:$0xff] }
  0xb4   :  { %v321_v45 = vpack.c.bf16 %v305_v42, %v305_v42  ;;  %v309_v46 = vsel %vm277_vm14, %v261_v39, %v293_v40  ;;  %vm270_vm1 = vcmp.ge.f32.partialorder %v254_v44, 0.0  ;;  %v286_v47 = vmul.f32 0.2, %v254_v44 }
  0xb5   :  { %v325_v48 = vpack.c.bf16 %v309_v46, %v309_v46  ;;  %v298_v49 = vsel %vm266_vm15, %v250_v41, %v282_v43 }
  0xb6   :  { %338 = vst.msk [vmem:[%s587_s2 + $0x28] sm:$0xf] %vm327_vm4, %v321_v45  ;;  %v314_v50 = vpack.c.bf16 %v298_v49, %v298_v49  ;;  %v302_v51 = vsel %vm270_vm1, %v254_v44, %v286_v47 }
  0xb7   :  { %342 = vst.msk [vmem:[%s587_s2 + $0x38] sm:$0xf] %vm327_vm4, %v325_v48  ;;  %v318_v52 = vpack.c.bf16 %v302_v51, %v302_v51 }
  0xb8   :  { %331 = vst.msk [vmem:[%s587_s2 + $0xc] sm:$0xf] %vm327_vm4, %v314_v50  ;;  %v258_v53 = vld [vmem:[#allocation2 + $0x58] sm:$0xff] }
  0xb9   :  { %335 = vst.msk [vmem:[%s587_s2 + $0x1c] sm:$0xf] %vm327_vm4, %v318_v52  ;;  %vm274_vm0 = vcmp.ge.f32.partialorder %v258_v53, 0.0  ;;  %v290_v54 = vmul.f32 0.2, %v258_v53  ;;  %v262_v55 = vld [vmem:[#allocation2 + $0x78] sm:$0xff] }
  0xba   :  { %vm278_vm2 = vcmp.ge.f32.partialorder %v262_v55, 0.0  ;;  %v294_v56 = vmul.f32 0.2, %v262_v55 }
  0xbb   :  { %v306_v57 = vsel %vm274_vm0, %v258_v53, %v290_v54 }
  0xbc   :  { %v322_v58 = vpack.c.bf16 %v306_v57, %v306_v57  ;;  %v310_v59 = vsel %vm278_vm2, %v262_v55, %v294_v56 }
  0xbd   :  { %v326_v60 = vpack.c.bf16 %v310_v59, %v310_v59 }
  0xbe   :  { %339 = vst.msk [vmem:[%s587_s2 + $0x2c] sm:$0xf] %vm327_vm4, %v322_v58 }
  0xbf   :  { %343 = vst.msk [vmem:[%s587_s2 + $0x3c] sm:$0xf] %vm327_vm4, %v326_v60 }

</bundles_post_ra>
